<compile_context>
chip_gen: v5e
topology: v5e:2x2
jax: 0.10.0
libtpu: 0.0.40
codegen_flags: <defaults>
</compile_context>

<pallas_src>
import functools

import jax
import jax.numpy as jnp
from jax import lax
from jax.experimental import pallas as pl
from jax.experimental.pallas import tpu as pltpu

# TODO(synk): stand-in for the module's global `config.threshold`.
DEFAULT_THRESHOLD = 127.5

_LANES = 128
# 1024 groups * 4 KiB/group = 4 MiB per input block (independent of dtype since
# a group is sublanes*128 elements = 4 KiB).  2 inputs x 2 pipeline buffers
# = 16 MiB of streaming VMEM.
_MAX_GROUPS = 1024
_VMEM_LIMIT_BYTES = 40 * 1024 * 1024


def _recall_kernel(inp_ref, tgt_ref, tp_ref, den_ref, tp_acc, den_acc, *,
                   thr, chunk_groups, chunks_per_row, groups_total, needs_mask):
    """grid = (split, batch, chunk).

    inp_ref/tgt_ref blocks: (1, chunk_groups, sublanes, 128) in native dtype.
    tp_ref/den_ref blocks:  (1, 1, 1, 1) f32 per (split, batch) row.
    tp_acc/den_acc: (sublanes, 128) f32 VMEM scratch carried across the chunk axis.
    """
    c = pl.program_id(2)

    @pl.when(c == 0)
    def _init():
        tp_acc[...] = jnp.zeros_like(tp_acc)
        den_acc[...] = jnp.zeros_like(den_acc)

    tgt = tgt_ref[0]                     # (chunk_groups, sublanes, 128)
    inp = inp_ref[0]

    tgt_pos = tgt >= thr                 # positives in target (native dtype cmp)
    inp_pos = inp >= thr                 # positives in prediction
    tf = tgt_pos.astype(jnp.float32)     # 1.0 where target positive (TP + FN)
    tpf = jnp.where(inp_pos, tf, 0.0)    # 1.0 where true positive

    if needs_mask:
        # Ragged / padded blocks exist; mask them only on the affected (cold)
        # steps so the hot streaming path stays at ~6 VPU ops per vreg pair.
        s = pl.program_id(0)
        g = s * chunks_per_row + c                    # logical (unclamped) chunk
        valid = groups_total - g * chunk_groups       # valid groups in this block
        ragged = valid < chunk_groups

        @pl.when(jnp.logical_not(ragged))
        def _acc_full():
            den_acc[...] += jnp.sum(tf, axis=0)
            tp_acc[...] += jnp.sum(tpf, axis=0)

        @pl.when(ragged)
        def _acc_masked():
            gi = lax.broadcasted_iota(jnp.int32, tf.shape, 0)
            m = gi < valid                            # valid <= 0 -> all masked
            den_acc[...] += jnp.sum(jnp.where(m, tf, 0.0), axis=0)
            tp_acc[...] += jnp.sum(jnp.where(m, tpf, 0.0), axis=0)
    else:
        # Per-lane partial sums over the leading (untiled) axis: pure VPU vreg
        # adds; the single cross-lane (XLU) reduce happens once in finalize.
        den_acc[...] += jnp.sum(tf, axis=0)
        tp_acc[...] += jnp.sum(tpf, axis=0)

    @pl.when(c == pl.num_programs(2) - 1)
    def _finalize():
        tp_ref[...] = jnp.reshape(jnp.sum(tp_acc[...]), (1, 1, 1, 1))
        den_ref[...] = jnp.reshape(jnp.sum(den_acc[...]), (1, 1, 1, 1))


def recall_pallas(inp, tgt, threshold=None):
    """inp/tgt: [batch, ...] arrays (e.g. NCHW). Returns scalar mean recall (f32)."""
    if threshold is None:
        threshold = DEFAULT_THRESHOLD
    # Pre-scaled threshold baked in as a Python float (x >= thr  <=>  x*255 >= threshold).
    thr = float(threshold) / 255.0

    b = inp.shape[0]
    n = 1
    for d in inp.shape[1:]:
        n *= d

    # Compare in the native floating dtype; fall back to f32 otherwise.
    if not (jnp.issubdtype(inp.dtype, jnp.floating) and inp.dtype == tgt.dtype):
        inp = inp.astype(jnp.float32)
        tgt = tgt.astype(jnp.float32)

    itemsize = jnp.dtype(inp.dtype).itemsize
    sublanes = {4: 8, 2: 16, 1: 32}.get(itemsize, 8)   # dtype-aware sublane packing
    tile = sublanes * _LANES

    x = jnp.reshape(inp, (b, n))
    t = jnp.reshape(tgt, (b, n))

    # Only pad up to the next (sublanes,128)-tile multiple; all chunk/grid
    # raggedness is masked inside the kernel (no full pad to the chunk boundary).
    # TODO(synk): an in-kernel element-level tail mask would remove this
    # remaining small-pad copy when n % tile != 0.
    if n % tile != 0:
        pad = tile - n % tile
        t = jnp.pad(t, ((0, 0), (0, pad)), constant_values=-jnp.inf)  # never a positive
        x = jnp.pad(x, ((0, 0), (0, pad)))
    groups_total = x.shape[1] // tile

    x = jnp.reshape(x, (b, groups_total, sublanes, _LANES))
    t = jnp.reshape(t, (b, groups_total, sublanes, _LANES))

    # Split the reduction into 2 parallel rows when the batch alone cannot feed
    # both v7x TensorCores (harmless no-op on single-core v5e/v6e).
    n_splits = 2 if (b == 1 and groups_total > 1) else 1

    chunk_groups = min(groups_total, _MAX_GROUPS)
    n_chunks = pl.cdiv(groups_total, chunk_groups)
    n_chunks = pl.cdiv(n_chunks, n_splits) * n_splits   # even chunk count per row
    chunk_groups = pl.cdiv(groups_total, n_chunks)      # rebalance (<= _MAX_GROUPS)
    chunks_per_row = n_chunks // n_splits
    # Blocks that actually contain data; clamp block indices to this so no grid
    # step ever issues a fully out-of-bounds DMA (masking makes it a no-op).
    last_valid_block = pl.cdiv(groups_total, chunk_groups) - 1
    needs_mask = (n_chunks * chunk_groups) != groups_total

    def data_index_map(s, bi, c):
        g = jnp.minimum(s * chunks_per_row + c, last_valid_block)
        return (bi, g, 0, 0)

    data_spec = pl.BlockSpec((1, chunk_groups, sublanes, _LANES), data_index_map)
    out_spec = pl.BlockSpec((1, 1, 1, 1), lambda s, bi, c: (s, bi, 0, 0))

    kernel = functools.partial(
        _recall_kernel, thr=thr, chunk_groups=chunk_groups,
        chunks_per_row=chunks_per_row, groups_total=groups_total,
        needs_mask=needs_mask)

    tp, den = pl.pallas_call(
        kernel,
        out_shape=(jax.ShapeDtypeStruct((n_splits, b, 1, 1), jnp.float32),
                   jax.ShapeDtypeStruct((n_splits, b, 1, 1), jnp.float32)),
        grid_spec=pltpu.PrefetchScalarGridSpec(
            num_scalar_prefetch=0,
            grid=(n_splits, b, chunks_per_row),
            in_specs=[data_spec, data_spec],
            out_specs=[out_spec, out_spec],
            scratch_shapes=[
                pltpu.VMEM((sublanes, _LANES), jnp.float32),   # TP partials
                pltpu.VMEM((sublanes, _LANES), jnp.float32),   # TP+FN partials
            ],
        ),
        compiler_params=pltpu.CompilerParams(
            dimension_semantics=("parallel", "parallel", "arbitrary"),
            vmem_limit_bytes=_VMEM_LIMIT_BYTES),
    )(x, t)

    # Tiny O(splits*B) combine stays in XLA: sum split partials, divide, mean.
    tp_b = jnp.sum(tp[:, :, 0, 0], axis=0)     # (b,)
    den_b = jnp.sum(den[:, :, 0, 0], axis=0)   # (b,)
    return jnp.mean(tp_b / den_b)              # NaN if a batch has no positives


def _reference(x, y, threshold):
    """Pure-JAX port of the original torch forward."""
    tt = y * 255.0
    pp = x * 255.0
    red_axes = tuple(range(1, x.ndim))
    above_t = (tt >= threshold).astype(jnp.float32)
    above_p = (pp >= threshold).astype(jnp.float32)
    under_p = (pp < threshold).astype(jnp.float32)
    tp = jnp.sum(above_t * above_p, axis=red_axes)
    fn = jnp.sum(above_t * under_p, axis=red_axes)
    return jnp.mean(tp / (tp + fn))


if __name__ == "__main__":
    key = jax.random.PRNGKey(0)

    # Main case: [batch, channel, height, width], divisible layout.
    k1, k2, k3, k4, k5, k6 = jax.random.split(key, 6)
    x = jax.random.uniform(k1, (2, 4, 16, 16), dtype=jnp.float32)   # predictions
    y = jax.random.uniform(k2, (2, 4, 16, 16), dtype=jnp.float32)   # targets
    rec = jax.block_until_ready(recall_pallas(x, y, threshold=DEFAULT_THRESHOLD))
    ref = _reference(x, y, DEFAULT_THRESHOLD)
    assert jnp.allclose(rec, ref, atol=1e-6, rtol=1e-6), (rec, ref)

    # batch == 1: exercises the 2-way reduction split + ragged-chunk masking.
    x1 = jax.random.uniform(k3, (1, 3, 64, 16), dtype=jnp.float32)
    y1 = jax.random.uniform(k4, (1, 3, 64, 16), dtype=jnp.float32)
    rec1 = jax.block_until_ready(recall_pallas(x1, y1, threshold=DEFAULT_THRESHOLD))
    ref1 = _reference(x1, y1, DEFAULT_THRESHOLD)
    assert jnp.allclose(rec1, ref1, atol=1e-6, rtol=1e-6), (rec1, ref1)

    # Non-tile-multiple element count: exercises the small-pad tail path.
    x2 = jax.random.uniform(k5, (2, 3, 10, 10), dtype=jnp.float32)
    y2 = jax.random.uniform(k6, (2, 3, 10, 10), dtype=jnp.float32)
    rec2 = jax.block_until_ready(recall_pallas(x2, y2, threshold=DEFAULT_THRESHOLD))
    ref2 = _reference(x2, y2, DEFAULT_THRESHOLD)
    assert jnp.allclose(rec2, ref2, atol=1e-6, rtol=1e-6), (rec2, ref2)

    print("KERNEL_OK")
</pallas_src>

<mosaic_0001>
module attributes {stable_mosaic.version = 11 : i64} {
  func.func @_recall_kernel(%arg0: i32, %arg1: i32, %arg2: i32, %arg3: memref<1x1x8x128xf32, #tpu.memory_space<vmem>>, %arg4: memref<1x1x8x128xf32, #tpu.memory_space<vmem>>, %arg5: memref<1x1x1x1xf32, #tpu.memory_space<vmem>>, %arg6: memref<1x1x1x1xf32, #tpu.memory_space<vmem>>, %arg7: memref<8x128xf32, #tpu.memory_space<vmem>>, %arg8: memref<8x128xf32, #tpu.memory_space<vmem>>) attributes {dimension_semantics = [#tpu.dimension_semantics<parallel>, #tpu.dimension_semantics<parallel>, #tpu.dimension_semantics<arbitrary>], iteration_bounds = array<i64: 1, 2, 1>, scalar_prefetch = 0 : i64, scratch_operands = 2 : i64, tpu.core_type = #tpu.core_type<tc>, window_params = [{transform_indices = @transform_0, window_bounds = array<i64: 1, 1, 8, 128>}, {transform_indices = @transform_1, window_bounds = array<i64: 1, 1, 8, 128>}, {transform_indices = @transform_2, window_bounds = array<i64: 1, 1, 1, 1>}, {transform_indices = @transform_3, window_bounds = array<i64: 1, 1, 1, 1>}]} {
    %c0_i32 = arith.constant 0 : i32
    %0 = arith.cmpi eq, %arg2, %c0_i32 : i32
    %1 = arith.extui %0 : i1 to i32
    %c0_i32_0 = arith.constant 0 : i32
    %2 = arith.cmpi ne, %1, %c0_i32_0 : i32
    scf.if %2 {
      %cst_22 = arith.constant 0.000000e+00 : f32
      %26 = vector.broadcast %cst_22 : f32 to vector<8x128xf32>
      %c0_23 = arith.constant 0 : index
      %c0_24 = arith.constant 0 : index
      %27 = vector.load %arg7[%c0_23, %c0_24] : memref<8x128xf32, #tpu.memory_space<vmem>>, vector<8x128xf32>
      tpu.vector_store %arg7[%c0_23, %c0_24], %26 {strides = array<i32>} : memref<8x128xf32, #tpu.memory_space<vmem>>, vector<8x128xf32>,
      %cst_25 = arith.constant 0.000000e+00 : f32
      %28 = vector.broadcast %cst_25 : f32 to vector<8x128xf32>
      %c0_26 = arith.constant 0 : index
      %c0_27 = arith.constant 0 : index
      %29 = vector.load %arg8[%c0_26, %c0_27] : memref<8x128xf32, #tpu.memory_space<vmem>>, vector<8x128xf32>
      tpu.vector_store %arg8[%c0_26, %c0_27], %28 {strides = array<i32>} : memref<8x128xf32, #tpu.memory_space<vmem>>, vector<8x128xf32>,
    } else {
    }
    %c0 = arith.constant 0 : index
    %c0_1 = arith.constant 0 : index
    %c0_2 = arith.constant 0 : index
    %c0_3 = arith.constant 0 : index
    %3 = vector.load %arg4[%c0, %c0_1, %c0_2, %c0_3] : memref<1x1x8x128xf32, #tpu.memory_space<vmem>>, vector<1x1x8x128xf32>
    %4 = vector.shape_cast %3 : vector<1x1x8x128xf32> to vector<1x8x128xf32>
    %c0_4 = arith.constant 0 : index
    %c0_5 = arith.constant 0 : index
    %c0_6 = arith.constant 0 : index
    %c0_7 = arith.constant 0 : index
    %5 = vector.load %arg3[%c0_4, %c0_5, %c0_6, %c0_7] : memref<1x1x8x128xf32, #tpu.memory_space<vmem>>, vector<1x1x8x128xf32>
    %6 = vector.shape_cast %5 : vector<1x1x8x128xf32> to vector<1x8x128xf32>
    %cst = arith.constant 5.000000e-01 : f32
    %7 = vector.broadcast %cst : f32 to vector<1x8x128xf32>
    %8 = arith.cmpf oge, %4, %7 : vector<1x8x128xf32>
    %cst_8 = arith.constant 5.000000e-01 : f32
    %9 = vector.broadcast %cst_8 : f32 to vector<1x8x128xf32>
    %10 = arith.cmpf oge, %6, %9 : vector<1x8x128xf32>
    %11 = arith.extui %8 : vector<1x8x128xi1> to vector<1x8x128xi32>
    %12 = arith.sitofp %11 : vector<1x8x128xi32> to vector<1x8x128xf32>
    %cst_9 = arith.constant 0.000000e+00 : f32
    %13 = vector.broadcast %cst_9 : f32 to vector<1x8x128xf32>
    %14 = arith.select %10, %12, %13 : vector<1x8x128xi1>, vector<1x8x128xf32>
    %c0_10 = arith.constant 0 : index
    %c0_11 = arith.constant 0 : index
    %15 = vector.load %arg8[%c0_10, %c0_11] : memref<8x128xf32, #tpu.memory_space<vmem>>, vector<8x128xf32>
    %cst_12 = arith.constant dense<0.000000e+00> : vector<8x128xf32>
    %16 = vector.multi_reduction <add>, %12, %cst_12 [0] : vector<1x8x128xf32> to vector<8x128xf32>
    %17 = arith.addf %15, %16 : vector<8x128xf32>
    %c0_13 = arith.constant 0 : index
    %c0_14 = arith.constant 0 : index
    %18 = vector.load %arg8[%c0_13, %c0_14] : memref<8x128xf32, #tpu.memory_space<vmem>>, vector<8x128xf32>
    tpu.vector_store %arg8[%c0_13, %c0_14], %17 {strides = array<i32>} : memref<8x128xf32, #tpu.memory_space<vmem>>, vector<8x128xf32>,
    %c0_15 = arith.constant 0 : index
    %c0_16 = arith.constant 0 : index
    %19 = vector.load %arg7[%c0_15, %c0_16] : memref<8x128xf32, #tpu.memory_space<vmem>>, vector<8x128xf32>
    %cst_17 = arith.constant dense<0.000000e+00> : vector<8x128xf32>
    %20 = vector.multi_reduction <add>, %14, %cst_17 [0] : vector<1x8x128xf32> to vector<8x128xf32>
    %21 = arith.addf %19, %20 : vector<8x128xf32>
    %c0_18 = arith.constant 0 : index
    %c0_19 = arith.constant 0 : index
    %22 = vector.load %arg7[%c0_18, %c0_19] : memref<8x128xf32, #tpu.memory_space<vmem>>, vector<8x128xf32>
    tpu.vector_store %arg7[%c0_18, %c0_19], %21 {strides = array<i32>} : memref<8x128xf32, #tpu.memory_space<vmem>>, vector<8x128xf32>,
    %c0_i32_20 = arith.constant 0 : i32
    %23 = arith.cmpi eq, %arg2, %c0_i32_20 : i32
    %24 = arith.extui %23 : i1 to i32
    %c0_i32_21 = arith.constant 0 : i32
    %25 = arith.cmpi ne, %24, %c0_i32_21 : i32
    scf.if %25 {
      %c0_22 = arith.constant 0 : index
      %c0_23 = arith.constant 0 : index
      %26 = vector.load %arg7[%c0_22, %c0_23] : memref<8x128xf32, #tpu.memory_space<vmem>>, vector<8x128xf32>
      %27 = vector.shape_cast %26 : vector<8x128xf32> to vector<1x8x128xf32>
      %cst_24 = arith.constant dense<0.000000e+00> : vector<1xf32>
      %28 = vector.multi_reduction <add>, %27, %cst_24 [1, 2] : vector<1x8x128xf32> to vector<1xf32>
      %29 = vector.shape_cast %28 : vector<1xf32> to vector<1x1x1xf32>
      %30 = vector.extract %29[0, 0, 0] : f32 from vector<1x1x1xf32>
      %31 = vector.broadcast %30 : f32 to vector<1x1x1x1xf32>
      %c0_25 = arith.constant 0 : index
      %c0_26 = arith.constant 0 : index
      %c0_27 = arith.constant 0 : index
      %c0_28 = arith.constant 0 : index
      %32 = vector.load %arg5[%c0_25, %c0_26, %c0_27, %c0_28] : memref<1x1x1x1xf32, #tpu.memory_space<vmem>>, vector<1x1x1x1xf32>
      tpu.vector_store %arg5[%c0_25, %c0_26, %c0_27, %c0_28], %31 {strides = array<i32>} : memref<1x1x1x1xf32, #tpu.memory_space<vmem>>, vector<1x1x1x1xf32>,
      %c0_29 = arith.constant 0 : index
      %c0_30 = arith.constant 0 : index
      %33 = vector.load %arg8[%c0_29, %c0_30] : memref<8x128xf32, #tpu.memory_space<vmem>>, vector<8x128xf32>
      %34 = vector.shape_cast %33 : vector<8x128xf32> to vector<1x8x128xf32>
      %cst_31 = arith.constant dense<0.000000e+00> : vector<1xf32>
      %35 = vector.multi_reduction <add>, %34, %cst_31 [1, 2] : vector<1x8x128xf32> to vector<1xf32>
      %36 = vector.shape_cast %35 : vector<1xf32> to vector<1x1x1xf32>
      %37 = vector.extract %36[0, 0, 0] : f32 from vector<1x1x1xf32>
      %38 = vector.broadcast %37 : f32 to vector<1x1x1x1xf32>
      %c0_32 = arith.constant 0 : index
      %c0_33 = arith.constant 0 : index
      %c0_34 = arith.constant 0 : index
      %c0_35 = arith.constant 0 : index
      %39 = vector.load %arg6[%c0_32, %c0_33, %c0_34, %c0_35] : memref<1x1x1x1xf32, #tpu.memory_space<vmem>>, vector<1x1x1x1xf32>
      tpu.vector_store %arg6[%c0_32, %c0_33, %c0_34, %c0_35], %38 {strides = array<i32>} : memref<1x1x1x1xf32, #tpu.memory_space<vmem>>, vector<1x1x1x1xf32>,
    } else {
    }
    return
  }
  func.func @transform_0(%arg0: i32, %arg1: i32, %arg2: i32) -> (i32, i32, i32, i32) {
    %c1_i32 = arith.constant 1 : i32
    %0 = arith.muli %arg0, %c1_i32 : i32
    %1 = arith.addi %0, %arg2 : i32
    %c0_i32 = arith.constant 0 : i32
    %2 = arith.minsi %1, %c0_i32 : i32
    %c0_i32_0 = arith.constant 0 : i32
    %c0_i32_1 = arith.constant 0 : i32
    %c0_i32_2 = arith.constant 0 : i32
    return %arg1, %2, %c0_i32_0, %c0_i32_1 : i32, i32, i32, i32
  }
  func.func @transform_1(%arg0: i32, %arg1: i32, %arg2: i32) -> (i32, i32, i32, i32) {
    %c1_i32 = arith.constant 1 : i32
    %0 = arith.muli %arg0, %c1_i32 : i32
    %1 = arith.addi %0, %arg2 : i32
    %c0_i32 = arith.constant 0 : i32
    %2 = arith.minsi %1, %c0_i32 : i32
    %c0_i32_0 = arith.constant 0 : i32
    %c0_i32_1 = arith.constant 0 : i32
    %c0_i32_2 = arith.constant 0 : i32
    return %arg1, %2, %c0_i32_0, %c0_i32_1 : i32, i32, i32, i32
  }
  func.func @transform_2(%arg0: i32, %arg1: i32, %arg2: i32) -> (i32, i32, i32, i32) {
    %c0_i32 = arith.constant 0 : i32
    %c0_i32_0 = arith.constant 0 : i32
    %c0_i32_1 = arith.constant 0 : i32
    return %arg0, %arg1, %c0_i32, %c0_i32_0 : i32, i32, i32, i32
  }
  func.func @transform_3(%arg0: i32, %arg1: i32, %arg2: i32) -> (i32, i32, i32, i32) {
    %c0_i32 = arith.constant 0 : i32
    %c0_i32_0 = arith.constant 0 : i32
    %c0_i32_1 = arith.constant 0 : i32
    return %arg0, %arg1, %c0_i32, %c0_i32_0 : i32, i32, i32, i32
  }
}

</mosaic_0001>

<bundles_post_ra>
// kernel: tpu_custom_call.1
= control target key start
LH: loop header
LB: loop body
LE: loop exit
PB: predicated region body
PF: predicated region fallthrough
CT: control target
= control target key end

     0   :  { %9 = vsyncpa [#allocation5], 0  ;;  %s818_s0 = inlined_call_operand.hbm [shape: f32[2,1,8,128], index: 0, kind: input, shape index: {}]   ;;  %s819_s1 = inlined_call_operand.hbm [shape: f32[2,1,8,128], index: 1, kind: input, shape index: {}]   ;;  %s820_s2 = inlined_call_operand.vmem [shape: f32[1,2,1,1], index: 2, kind: output, shape index: {0}]   ;;  %s821_s3 = inlined_call_operand.vmem [shape: f32[1,2,1,1], index: 3, kind: output, shape index: {1}]  }
   0x1   :  { %11 = vsyncpa [#allocation5 + $0x1], 0 }
   0x2   :  { %12 = vsyncpa [#allocation7], 0 }
   0x3   :  { %14 = vsyncpa [#allocation7 + $0x1], 0  ;;  %s720_s12 = smov 0   ;;  %s722_s13 = smov 0  }
   0x4   :  { %s724_s14 = smov 0   ;;  %s726_s15 = smov 0  }
   0x5   :  { %s728_s16 = smov 0   ;;  %s730_s17 = smov 0  }
   0x6 LB: > { %s504_s18 = sadd.s32 4294967295, %s697_s17   ;;  %s35_s19 = sadd.s32 1, %s693_s16  ;;  %s697_s17 = sphi %s730_s17, %s20_s17   ;;  %s693_s16 = sphi %s728_s16, %s828_s16   ;;  %s689_s15 = sphi %s726_s15, %s827_s15   ;;  %s685_s14 = sphi %s724_s14, %s826_s14   ;;  %s681_s13 = sphi %s722_s13, %s825_s13   ;;  %s677_s12 = sphi %s720_s12, %s824_s12  }
   0x7   : > { %p37_p0 = scmp.ge.s32.totalorder %s35_s19, 2  ;;  %s54_s20 = sadd.s32 1, %s685_s14 }
   0x8   : > { %p61_p1 = scmp.ne.s32.totalorder %s685_s14, %s681_s13  ;;  %p62_p2 = scmp.eq.s32.totalorder %s697_s17, 0 }
   0x9   : > { %s830_s19 = smov (%p37_p0, %s35_s19), 0  ;;  %p67_p4 = scmp.ne.s32.totalorder %s681_s13, %s677_s12 }
   0xa   : > { %p756_p3 = por %p62_p2, %p61_p1  ;;  %s49_s22 = ssub.s32 %s693_s16, %s830_s19 }
   0xb   : > { %p68_p5 = scmp.eq.s32.totalorder %s504_s18, 0  ;;  %p52_p6 = scmp.eq.s32.totalorder %s49_s22, 0 }
   0xc   : > { %p533_p8 = scmp.lt.s32.totalorder %s697_s17, 2  ;;  %s181_s25 = sand.u32 1, %s685_s14  }
   0xd   : > { %p763_p7 = por %p68_p5, %p67_p4  ;;  %s509_s26 = sshll.u32 %s693_s16, 3 }
   0xe   : > { %s769_s24 = scalar_select %p52_p6, %s685_s14, %s54_s20  }
   0xf   : > { %s508_s27 = sshll.u32 %s181_s25, 3  ;;  %s193_s30 = scalar_lea.hbm %s818_s0, %s509_s26 }
  0x10   : > { %s195_s4 = sshll.u32 %s193_s30, 4  ;;  %s185_s5 = scalar_lea.vmem [#allocation4], %s508_s27  ;;  %s196_s4 = int_to_ptr.hbm [resolvable:$true] %s195_s4 }
  0x11   : > { %s197_s6 = sshll.u32 %s185_s5, 4  ;;  %p527_p9 = pnand %p533_p8, %p756_p3  ;;  %s198_s6 = int_to_ptr.vmem [resolvable:$true] %s197_s6 }
  0x12   : > { %p512_p10 = scmp.ge.s32.totalorder %s697_s17, 1  ;;  %p225_p11 = scmp.lt.s32.totalorder %s697_s17, 3 }
  0x13   : > { %s182_s7 = scalar_lea.sflag [#allocation5], %s181_s25  ;;  %s216_s10 = scalar_lea.hbm %s819_s1, %s509_s26 }
  0x14   : > { %529 = dma.hbm_to_vmem [thread:$0]  (!%p527_p9), %s196_s4, 128, %s198_s6, %s182_s7  }
  0x15   : > { %p226_p12 = pnand %p512_p10, %p225_p11  ;;  %s218_s11 = sshll.u32 %s216_s10, 4  ;;  %s219_s11 = int_to_ptr.hbm [resolvable:$true] %s218_s11 }
  0x16   : > { %s208_s12 = scalar_lea.vmem [#allocation6], %s508_s27  ;;  %s205_s20 = scalar_lea.sflag [#allocation7], %s181_s25 }
  0x17   : > { %s220_s18 = sshll.u32 %s208_s12, 4  ;;  %229 = sbr.rel (%p226_p12) target bundleno = 223 (0xdf), region = 28  ;;  %s221_s18 = int_to_ptr.vmem [resolvable:$true] %s220_s18 }
  0x18   : > { %532 = dma.hbm_to_vmem [thread:$0]  (!%p527_p9), %s219_s11, 128, %s221_s18, %s205_s20  }
  0x19   : > { %s231_s21 = sand.u32 (!%p226_p12), 1, %s681_s13  }
  0x1a   : > { %s513_s22 = sshll.u32 (!%p226_p12), %s231_s21, 3  ;;  %s232_s28 = scalar_lea.sflag (!%p226_p12), [#allocation5], %s231_s21 }
  0x1b   : > { %s235_s29 = scalar_lea.vmem (!%p226_p12), [#allocation4], %s513_s22 }
  0x1c   : > { %668 = dma.done.wait (%p763_p7), %s232_s28, 128  }
  0x1d   : > { %670 = vsyncadd (%p763_p7), %s232_s28, 4294967168  ;;  %s242_s26 = scalar_lea.sflag [#allocation7], %s231_s21  ;;  %s245_s27 = scalar_lea.vmem [#allocation6], %s513_s22 }
  0x1e   : > { %672 = dma.done.wait (%p763_p7), %s242_s26, 128  }
  0x1f   : > { %674 = vsyncadd (%p763_p7), %s242_s26, 4294967168  ;;  %v309_v0 = vld [vmem:[%s245_s27] sm:$0xff]  ;;  %v310_v1 = vld [vmem:[%s235_s29] sm:$0xff]  ;;  %v699_v2 = vmov 0.0   ;;  %p291_p13 = scmp.lt.s32.totalorder %s689_s15, 1  ;;  %vm338_vm2 = vcmask 0  }
  0x20   : > { %vm311_vm0 = vcmp.ge.f32.partialorder %v309_v0, 0.5  ;;  %vm312_vm1 = vcmp.ge.f32.partialorder %v310_v1, 0.5 }
  0x21   : > { %v515_v3 = vsel %vm311_vm0, 1.0, %v699_v2  ;;  %s832_s15 = smov (!%p291_p13, %s689_s15), 1 }
  0x22   : > { %v315_v4 = vsel %vm312_vm1, %v515_v3, 0.0  ;;  %s295_s30 = scalar_lea.vmem %s820_s2, %s832_s15  ;;  %s302_s7 = scalar_lea.vmem %s821_s3, %s832_s15 }
  0x23   : > { %328 = vadd.xlane.f32.xlu0 %v315_v4 }
  0x2b   : > { %341 = vadd.xlane.f32.xlu0 %v515_v3 }
  0x96   : > { %v329_v5 = vpop.xlane.xlu0 %328 }
  0x97   : > { %v330_v6 = vrot.slane %v329_v5, 4 }
  0x99   : > { %v331_v7 = vadd.f32 %v330_v6, %v329_v5 }
  0x9b   : > { %v332_v8 = vrot.slane %v331_v7, 2 }
  0x9d   : > { %v333_v9 = vadd.f32 %v332_v8, %v331_v7 }
  0x9e   : > { %v342_v10 = vpop.xlane.xlu0 %341 }
  0x9f   : > { %v343_v11 = vrot.slane %v342_v10, 4  ;;  %v334_v12 = vrot.slane %v333_v9, 1 }
  0xa1   : > { %v344_v13 = vadd.f32 %v343_v11, %v342_v10  ;;  %v335_v14 = vadd.f32 %v334_v12, %v333_v9 }
  0xa3   : > { %v345_v15 = vrot.slane %v344_v13, 2  ;;  %518 = vpush %v335_v14 }
  0xa5   : > { %v346_v16 = vadd.f32 %v345_v15, %v344_v13 }
  0xa7   : > { %v347_v17 = vrot.slane %v346_v16, 1 }
  0xa9   : > { %v348_v18 = vadd.f32 %v347_v17, %v346_v16 }
  0xab   : > { %520 = vpush %v348_v18 }
  0xd4   : > { %s519_s4 = spop %518 }
  0xd5   : > { %v337_v19 = vstv %s519_s4 }
  0xd6   : > { %339 = vst.msk [vmem:[%s295_s30] sm:$0x1] %vm338_vm2, %v337_v19 }
  0xdc   : > { %s521_s8 = spop %520 }
  0xdd   : > { %v350_v20 = vstv %s521_s8 }
  0xde   : > { %351 = vst.msk [vmem:[%s302_s7] sm:$0x1] %vm338_vm2, %v350_v20 }
  0xdf PF: > { %s20_s17 = sadd.s32 1, %s697_s17   ;;  %s824_s12 = smov %s681_s13 }
  0xe0   : > { %p17_p0 = scmp.ge.s32.totalorder %s20_s17, 4   ;;  %s825_s13 = smov %s685_s14 }
  0xe1   : > { %s826_s14 = smov %s769_s24  ;;  %s827_s15 = smov %s693_s16 }
  0xe2   : > { %s828_s16 = smov %s830_s19  ;;  %19 = sbr.rel (!%p17_p0) target bundleno = 6 (0x6), region = 101 }
  0xe7   :  { %397 = vsyncpa [#allocation5], 1 }
  0xe8   :  { %399 = vsyncpa [#allocation5 + $0x1], 1 }
  0xe9   :  { %400 = vsyncpa [#allocation7], 1 }
  0xea   :  { %402 = vsyncpa [#allocation7 + $0x1], 1 }

</bundles_post_ra>
